<compile_context>
chip_gen: v6e
topology: v6e:2x2x1
jax: 0.10.0
libtpu: 0.0.40
codegen_flags: <defaults>
</compile_context>

<pallas_src>
import math
import functools

import jax
import jax.numpy as jnp
from jax import lax
from jax.experimental import pallas as pl
from jax.experimental.pallas import tpu as pltpu


LANE = 128
V_PAD = 128                 # critic value slab width (lane-dense)
MAX_TILE_ROWS = 1024        # per perf review: large row tiles, VMEM is not a constraint
LOG2PI = math.log(2.0 * math.pi)


def _round_up(x, m):
    return ((x + m - 1) // m) * m


# ----------------------------------------------------------------------------
# Kernel bodies
# ----------------------------------------------------------------------------

def _mlp_forward(x, w1, b1, w2, b2, w3, b3, tanh_dtype):
    """tanh(x@W1+b1) -> tanh(.@W2+b2) -> .@W3+b3.

    bf16 matmul inputs, f32 accumulation; tanh in `tanh_dtype`
    (bf16 on v6e/v7x EUP, f32 on v5e).
    """
    h = jnp.dot(x.astype(jnp.bfloat16), w1,
                preferred_element_type=jnp.float32) + b1
    h = jnp.tanh(h.astype(tanh_dtype)).astype(jnp.bfloat16)
    h = jnp.dot(h, w2, preferred_element_type=jnp.float32) + b2
    h = jnp.tanh(h.astype(tanh_dtype)).astype(jnp.bfloat16)
    return jnp.dot(h, w3, preferred_element_type=jnp.float32) + b3


def _pack_gaussian(mu, log_std, noise, action_dim, value):
    """Sample action, compute log-prob, pack into one lane-dense slab.

    Layout: lanes [0, A) = action, lane A = value (or logp if value is None),
    lane A+1 = logp (fused case).  Padding lanes are zeroed.
    """
    col = lax.broadcasted_iota(jnp.int32, mu.shape, 1)
    amask = col < action_dim
    action = mu + jnp.exp(log_std) * noise
    term = noise * noise + 2.0 * log_std + jnp.float32(LOG2PI)
    logp = -0.5 * jnp.sum(jnp.where(amask, term, 0.0), axis=-1, keepdims=True)
    packed = jnp.where(amask, action, jnp.float32(0.0))
    if value is None:
        packed = jnp.where(col == action_dim, logp, packed)
    else:
        packed = jnp.where(col == action_dim, value, packed)
        packed = jnp.where(col == action_dim + 1, logp, packed)
    return packed


def _critic_kernel(tanh_dtype, x_ref, w1, b1, w2, b2, w3, b3, out_ref):
    out_ref[...] = _mlp_forward(x_ref[...], w1[...], b1[...], w2[...], b2[...],
                                w3[...], b3[...], tanh_dtype)


def _actor_sample_kernel(action_dim, tanh_dtype,
                         x_ref, w1, b1, w2, b2, w3, b3,
                         log_std_ref, noise_ref, out_ref):
    mu = _mlp_forward(x_ref[...], w1[...], b1[...], w2[...], b2[...],
                      w3[...], b3[...], tanh_dtype)
    out_ref[...] = _pack_gaussian(mu, log_std_ref[...], noise_ref[...],
                                  action_dim, value=None)


def _actor_logprob_kernel(action_dim, tanh_dtype,
                          x_ref, w1, b1, w2, b2, w3, b3,
                          log_std_ref, act_ref, out_ref):
    mu = _mlp_forward(x_ref[...], w1[...], b1[...], w2[...], b2[...],
                      w3[...], b3[...], tanh_dtype)
    mu_a = mu[:, :action_dim]
    ls_a = log_std_ref[...][:, :action_dim]
    z = (act_ref[...] - mu_a) * jnp.exp(-ls_a)
    term = z * z + 2.0 * ls_a + jnp.float32(LOG2PI)
    logp = -0.5 * jnp.sum(term, axis=-1, keepdims=True)
    out_ref[...] = jnp.broadcast_to(logp, out_ref.shape)   # lane-dense store


def _fused_kernel(action_dim, a_pad, tanh_dtype,
                  x_ref, w1, b1, w2, b2, w3, b3,
                  log_std_ref, noise_ref, out_ref):
    """Training path: actor+critic as ONE 256-wide MLP (block-diag weights)."""
    y = _mlp_forward(x_ref[...], w1[...], b1[...], w2[...], b2[...],
                     w3[...], b3[...], tanh_dtype)
    mu = y[:, :a_pad]
    value = y[:, a_pad:a_pad + 1]
    out_ref[...] = _pack_gaussian(mu, log_std_ref[...], noise_ref[...],
                                  action_dim, value=value)


# ----------------------------------------------------------------------------
# pallas_call wrappers (batch grid; weights resident across grid steps)
# ----------------------------------------------------------------------------

def _resident_specs(arrays):
    # Same block every step -> weights stay resident in VMEM across the grid.
    # TODO(synk): pipeline_mode=pl.Buffered(1) would drop the dead second
    # buffer (v7x VMEM headroom) once safe in the target jax version.
    return [pl.BlockSpec(a.shape, lambda i: (0, 0)) for a in arrays]


def _compiler_params():
    return pltpu.CompilerParams(dimension_semantics=("parallel",))


def _run_critic(p, tanh_dtype, x, tile_b, steps):
    rows, s_dim = x.shape
    weights = [p["w1"], p["b1"], p["w2"], p["b2"], p["w3"], p["b3"]]
    grid_spec = pltpu.PrefetchScalarGridSpec(
        num_scalar_prefetch=0, grid=(steps,),
        in_specs=[pl.BlockSpec((tile_b, s_dim), lambda i: (i, 0))]
                 + _resident_specs(weights),
        out_specs=pl.BlockSpec((tile_b, V_PAD), lambda i: (i, 0)),
    )
    return pl.pallas_call(
        functools.partial(_critic_kernel, tanh_dtype),
        out_shape=jax.ShapeDtypeStruct((rows, V_PAD), jnp.float32),
        grid_spec=grid_spec,
        compiler_params=_compiler_params(),
    )(x, *weights)


def _run_actor_sample(p, log_std, noise, action_dim, tanh_dtype, x, tile_b, steps):
    rows, s_dim = x.shape
    a_pad = p["out_pad"]
    weights = [p["w1"], p["b1"], p["w2"], p["b2"], p["w3"], p["b3"]]
    grid_spec = pltpu.PrefetchScalarGridSpec(
        num_scalar_prefetch=0, grid=(steps,),
        in_specs=[pl.BlockSpec((tile_b, s_dim), lambda i: (i, 0))]
                 + _resident_specs(weights)
                 + [pl.BlockSpec(log_std.shape, lambda i: (0, 0)),
                    pl.BlockSpec((tile_b, a_pad), lambda i: (i, 0))],
        out_specs=pl.BlockSpec((tile_b, a_pad), lambda i: (i, 0)),
    )
    return pl.pallas_call(
        functools.partial(_actor_sample_kernel, action_dim, tanh_dtype),
        out_shape=jax.ShapeDtypeStruct((rows, a_pad), jnp.float32),
        grid_spec=grid_spec,
        compiler_params=_compiler_params(),
    )(x, *weights, log_std, noise)


def _run_actor_logprob(p, log_std, actions, action_dim, tanh_dtype, x, tile_b, steps):
    rows, s_dim = x.shape
    a_dim = actions.shape[1]
    weights = [p["w1"], p["b1"], p["w2"], p["b2"], p["w3"], p["b3"]]
    grid_spec = pltpu.PrefetchScalarGridSpec(
        num_scalar_prefetch=0, grid=(steps,),
        in_specs=[pl.BlockSpec((tile_b, s_dim), lambda i: (i, 0))]
                 + _resident_specs(weights)
                 + [pl.BlockSpec(log_std.shape, lambda i: (0, 0)),
                    pl.BlockSpec((tile_b, a_dim), lambda i: (i, 0))],
        out_specs=pl.BlockSpec((tile_b, LANE), lambda i: (i, 0)),
    )
    return pl.pallas_call(
        functools.partial(_actor_logprob_kernel, action_dim, tanh_dtype),
        out_shape=jax.ShapeDtypeStruct((rows, LANE), jnp.float32),
        grid_spec=grid_spec,
        compiler_params=_compiler_params(),
    )(x, *weights, log_std, actions)


def _run_fused(cw, log_std, noise, action_dim, a_pad, tanh_dtype, x, tile_b, steps):
    rows, s_dim = x.shape
    weights = [cw["w1"], cw["b1"], cw["w2"], cw["b2"], cw["w3"], cw["b3"]]
    grid_spec = pltpu.PrefetchScalarGridSpec(
        num_scalar_prefetch=0, grid=(steps,),
        in_specs=[pl.BlockSpec((tile_b, s_dim), lambda i: (i, 0))]
                 + _resident_specs(weights)
                 + [pl.BlockSpec(log_std.shape, lambda i: (0, 0)),
                    pl.BlockSpec((tile_b, a_pad), lambda i: (i, 0))],
        out_specs=pl.BlockSpec((tile_b, a_pad), lambda i: (i, 0)),
    )
    return pl.pallas_call(
        functools.partial(_fused_kernel, action_dim, a_pad, tanh_dtype),
        out_shape=jax.ShapeDtypeStruct((rows, a_pad), jnp.float32),
        grid_spec=grid_spec,
        compiler_params=_compiler_params(),
    )(x, *weights, log_std, noise)


# ----------------------------------------------------------------------------
# Parameter init (xavier_normal_ weights, zero biases — matches init_weight).
# W1 keeps the TRUE input width (no lane pad on x); output dims lane-padded.
# ----------------------------------------------------------------------------

def _init_mlp_params(key, in_dim, hidden, out_dim, out_pad):
    h_pad = _round_up(hidden, LANE)
    k1, k2, k3 = jax.random.split(key, 3)

    def xavier(k, fi, fo, row_pad, col_pad):
        std = math.sqrt(2.0 / (fi + fo))
        w = std * jax.random.normal(k, (fi, fo), dtype=jnp.float32)
        w = jnp.pad(w, ((0, row_pad - fi), (0, col_pad - fo)))
        return w.astype(jnp.bfloat16)

    return dict(
        w1=xavier(k1, in_dim, hidden, in_dim, h_pad),
        b1=jnp.zeros((1, h_pad), jnp.float32),
        w2=xavier(k2, hidden, hidden, h_pad, h_pad),
        b2=jnp.zeros((1, h_pad), jnp.float32),
        w3=xavier(k3, hidden, out_dim, h_pad, out_pad),
        b3=jnp.zeros((1, out_pad), jnp.float32),
        h_pad=h_pad, in_dim=in_dim, out_dim=out_dim, out_pad=out_pad,
    )


def _combine_actor_critic(ap, cp):
    """W1 concatenated, W2/W3 block-diagonal -> one 256-wide MLP per layer."""
    h = ap["h_pad"]
    z = lambda r, c: jnp.zeros((r, c), jnp.bfloat16)
    w1 = jnp.concatenate([ap["w1"], cp["w1"]], axis=1)
    b1 = jnp.concatenate([ap["b1"], cp["b1"]], axis=1)
    w2 = jnp.concatenate(
        [jnp.concatenate([ap["w2"], z(h, h)], axis=1),
         jnp.concatenate([z(h, h), cp["w2"]], axis=1)], axis=0)
    b2 = jnp.concatenate([ap["b2"], cp["b2"]], axis=1)
    w3 = jnp.concatenate(
        [jnp.concatenate([ap["w3"], z(h, cp["out_pad"])], axis=1),
         jnp.concatenate([z(h, ap["out_pad"]), cp["w3"]], axis=1)], axis=0)
    b3 = jnp.concatenate([ap["b3"], cp["b3"]], axis=1)
    return dict(w1=w1, b1=b1, w2=w2, b2=b2, w3=w3, b3=b3)


def _prep_rows(arr, batch):
    """Row tiling only; no feature-dim padding.  Small batches: one tile."""
    if batch <= MAX_TILE_ROWS:
        return arr, batch, 1
    tile_b = MAX_TILE_ROWS
    rows = _round_up(batch, tile_b)
    if rows != batch:
        arr = jnp.pad(arr, ((0, rows - batch), (0, 0)))
    return arr, tile_b, rows // tile_b


# ----------------------------------------------------------------------------
# Actor_Critic: same interface as the torch module
# ----------------------------------------------------------------------------

class ActorCriticPallas:
    def __init__(self, key, state_dim, action_dim, hidden,
                 tanh_dtype=jnp.bfloat16):
        # tanh_dtype=bf16 targets v6e/v7x (bf16 EUP); pass jnp.float32 on v5e.
        ka, kc = jax.random.split(key)
        self.state_dim = state_dim
        self.action_dim = action_dim
        self.tanh_dtype = tanh_dtype
        # packed slab: action lanes + value lane + logp lane, lane-aligned
        self.a_pad = _round_up(action_dim + 2, LANE)
        self.actor_params = _init_mlp_params(ka, state_dim, hidden,
                                             action_dim, self.a_pad)
        self.critic_params = _init_mlp_params(kc, state_dim, hidden, 1, V_PAD)
        self.fused_params = _combine_actor_critic(self.actor_params,
                                                  self.critic_params)
        # state-independent log-std (nn.Parameter, untouched by init_weight)
        self.log_std = jnp.zeros((1, self.a_pad), jnp.float32)

    # ---- torch-module interface -----------------------------------------
    def forward(self, inputs):
        # torch forward() is `pass` -> returns None
        return None

    def get_value(self, states):
        B = states.shape[0]
        x, tile_b, steps = _prep_rows(states, B)
        v = _run_critic(self.critic_params, self.tanh_dtype, x, tile_b, steps)
        return v[:B, :1]

    def get_action_log_prob(self, states, key):
        B = states.shape[0]
        x, tile_b, steps = _prep_rows(states, B)
        noise = jax.random.normal(key, (x.shape[0], self.a_pad), jnp.float32)
        out = _run_actor_sample(self.actor_params, self.log_std, noise,
                                self.action_dim, self.tanh_dtype,
                                x, tile_b, steps)
        A = self.action_dim
        return out[:B, :A], out[:B, A:A + 1]

    def get_log_prob(self, states, actions):
        B = states.shape[0]
        x, tile_b, steps = _prep_rows(states, B)
        a, _, _ = _prep_rows(actions.astype(jnp.float32), B)
        logp = _run_actor_logprob(self.actor_params, self.log_std, a,
                                  self.action_dim, self.tanh_dtype,
                                  x, tile_b, steps)
        return logp[:B, :1]

    def get_entropy(self, states):
        # Entropy of the state-independent diagonal Gaussian: scalar, no MLP.
        B = states.shape[0]
        ent = jnp.sum(self.log_std[:, :self.action_dim]
                      + jnp.float32(0.5 * (1.0 + LOG2PI)))
        return jnp.full((B, 1), ent, dtype=jnp.float32)

    # ---- fused training path: value + action + log-prob in ONE pallas_call
    def get_value_action_log_prob(self, states, key):
        B = states.shape[0]
        x, tile_b, steps = _prep_rows(states, B)
        noise = jax.random.normal(key, (x.shape[0], self.a_pad), jnp.float32)
        out = _run_fused(self.fused_params, self.log_std, noise,
                         self.action_dim, self.a_pad, self.tanh_dtype,
                         x, tile_b, steps)
        A = self.action_dim
        return out[:B, A:A + 1], out[:B, :A], out[:B, A + 1:A + 2]


# ----------------------------------------------------------------------------
# Demo / checks
# ----------------------------------------------------------------------------

def _ref_mlp(x, p, tanh_dtype):
    """Pure-JAX mirror of the kernel math (same padded bf16 weights)."""
    def layer(h, w, b, act):
        y = jnp.dot(h.astype(jnp.bfloat16), w,
                    preferred_element_type=jnp.float32) + b
        if act:
            y = jnp.tanh(y.astype(tanh_dtype)).astype(jnp.float32)
        return y
    h = layer(x, p["w1"], p["b1"], True)
    h = layer(h, p["w2"], p["b2"], True)
    return layer(h, p["w3"], p["b3"], False)


if __name__ == "__main__":
    B, S, A, H = 2, 16, 4, 32
    root = jax.random.PRNGKey(0)
    k_param, k_state, k_act, k_sample = jax.random.split(root, 4)

    model = ActorCriticPallas(k_param, state_dim=S, action_dim=A, hidden=H)

    states = jax.random.normal(k_state, (B, S), dtype=jnp.float32)
    actions = jax.random.normal(k_act, (B, A), dtype=jnp.float32)

    value = model.get_value(states)                                   # (B, 1)
    sampled_action, sample_logp = model.get_action_log_prob(states, k_sample)
    logp = model.get_log_prob(states, actions)                        # (B, 1)
    entropy = model.get_entropy(states)                               # (B, 1)
    fused_v, fused_a, fused_lp = model.get_value_action_log_prob(states,
                                                                 k_sample)

    jax.block_until_ready((value, sampled_action, sample_logp, logp, entropy,
                           fused_v, fused_a, fused_lp))

    assert value.shape == (B, 1)
    assert sampled_action.shape == (B, A)
    assert sample_logp.shape == (B, 1)
    assert logp.shape == (B, 1)
    assert entropy.shape == (B, 1)
    assert fused_v.shape == (B, 1)
    assert fused_a.shape == (B, A)
    assert fused_lp.shape == (B, 1)

    # fused (block-diagonal 256-wide) path matches the standalone kernels
    assert jnp.allclose(fused_v, value, atol=1e-3, rtol=1e-3)
    assert jnp.allclose(fused_a, sampled_action, atol=1e-3, rtol=1e-3)
    assert jnp.allclose(fused_lp, sample_logp, atol=1e-3, rtol=1e-3)

    # loose check against a pure-JAX reference (same padded bf16 weights)
    value_ref = _ref_mlp(states, model.critic_params, model.tanh_dtype)[:, :1]
    assert jnp.allclose(value, value_ref, atol=2e-2, rtol=2e-2)
    mu_ref = _ref_mlp(states, model.actor_params, model.tanh_dtype)[:, :A]
    logp_ref = -0.5 * jnp.sum((actions - mu_ref) ** 2 + LOG2PI,
                              axis=-1, keepdims=True)
    assert jnp.allclose(logp, logp_ref, atol=2e-2, rtol=2e-2)

    # entropy of N(mu, I) with log_std = 0
    ent_expect = A * 0.5 * (1.0 + LOG2PI)
    assert jnp.allclose(entropy, ent_expect, atol=1e-5)

    assert bool(jnp.isfinite(logp).all())
    assert bool(jnp.isfinite(sample_logp).all())

    print("KERNEL_OK")
</pallas_src>

<mosaic_0001>
module attributes {stable_mosaic.version = 11 : i64} {
  func.func @_critic_kernel(%arg0: i32, %arg1: memref<2x16xf32, #tpu.memory_space<vmem>>, %arg2: memref<16x128xbf16, #tpu.memory_space<vmem>>, %arg3: memref<1x128xf32, #tpu.memory_space<vmem>>, %arg4: memref<128x128xbf16, #tpu.memory_space<vmem>>, %arg5: memref<1x128xf32, #tpu.memory_space<vmem>>, %arg6: memref<128x128xbf16, #tpu.memory_space<vmem>>, %arg7: memref<1x128xf32, #tpu.memory_space<vmem>>, %arg8: memref<2x128xf32, #tpu.memory_space<vmem>>) attributes {dimension_semantics = [#tpu.dimension_semantics<parallel>], iteration_bounds = array<i64: 1>, scalar_prefetch = 0 : i64, scratch_operands = 0 : i64, tpu.core_type = #tpu.core_type<tc>, window_params = [{transform_indices = @transform_0, window_bounds = array<i64: 2, 16>}, {pipeline_mode = #tpu.pipeline_mode<synchronous>, transform_indices = @transform_1, window_bounds = array<i64: 16, 128>}, {pipeline_mode = #tpu.pipeline_mode<synchronous>, transform_indices = @transform_2, window_bounds = array<i64: 1, 128>}, {pipeline_mode = #tpu.pipeline_mode<synchronous>, transform_indices = @transform_3, window_bounds = array<i64: 128, 128>}, {pipeline_mode = #tpu.pipeline_mode<synchronous>, transform_indices = @transform_4, window_bounds = array<i64: 1, 128>}, {pipeline_mode = #tpu.pipeline_mode<synchronous>, transform_indices = @transform_5, window_bounds = array<i64: 128, 128>}, {pipeline_mode = #tpu.pipeline_mode<synchronous>, transform_indices = @transform_6, window_bounds = array<i64: 1, 128>}, {transform_indices = @transform_7, window_bounds = array<i64: 2, 128>}]} {
    %c0 = arith.constant 0 : index
    %c0_0 = arith.constant 0 : index
    %0 = vector.load %arg1[%c0, %c0_0] : memref<2x16xf32, #tpu.memory_space<vmem>>, vector<2x16xf32>
    %c0_1 = arith.constant 0 : index
    %c0_2 = arith.constant 0 : index
    %1 = vector.load %arg2[%c0_1, %c0_2] : memref<16x128xbf16, #tpu.memory_space<vmem>>, vector<16x128xbf16>
    %c0_3 = arith.constant 0 : index
    %c0_4 = arith.constant 0 : index
    %2 = vector.load %arg3[%c0_3, %c0_4] : memref<1x128xf32, #tpu.memory_space<vmem>>, vector<1x128xf32>
    %c0_5 = arith.constant 0 : index
    %c0_6 = arith.constant 0 : index
    %3 = vector.load %arg4[%c0_5, %c0_6] : memref<128x128xbf16, #tpu.memory_space<vmem>>, vector<128x128xbf16>
    %c0_7 = arith.constant 0 : index
    %c0_8 = arith.constant 0 : index
    %4 = vector.load %arg5[%c0_7, %c0_8] : memref<1x128xf32, #tpu.memory_space<vmem>>, vector<1x128xf32>
    %c0_9 = arith.constant 0 : index
    %c0_10 = arith.constant 0 : index
    %5 = vector.load %arg6[%c0_9, %c0_10] : memref<128x128xbf16, #tpu.memory_space<vmem>>, vector<128x128xbf16>
    %c0_11 = arith.constant 0 : index
    %c0_12 = arith.constant 0 : index
    %6 = vector.load %arg7[%c0_11, %c0_12] : memref<1x128xf32, #tpu.memory_space<vmem>>, vector<1x128xf32>
    %7 = arith.truncf %0 : vector<2x16xf32> to vector<2x16xbf16>
    %cst = arith.constant dense<0.000000e+00> : vector<2x128xf32>
    %8 = tpu.matmul %7, %1, %cst {dimension_numbers = #tpu.dot_dimension_numbers<[1], [0], [0], [1], [0, 0, 1, 1], [], []>} : vector<2x16xbf16>, vector<16x128xbf16>, vector<2x128xf32> -> vector<2x128xf32>
    %9 = vector.broadcast %2 : vector<1x128xf32> to vector<2x128xf32>
    %10 = arith.addf %8, %9 : vector<2x128xf32>
    %11 = arith.truncf %10 : vector<2x128xf32> to vector<2x128xbf16>
    %12 = math.tanh %11 : vector<2x128xbf16>
    %cst_13 = arith.constant dense<0.000000e+00> : vector<2x128xf32>
    %13 = tpu.matmul %12, %3, %cst_13 {dimension_numbers = #tpu.dot_dimension_numbers<[1], [0], [0], [1], [0, 0, 1, 1], [], []>} : vector<2x128xbf16>, vector<128x128xbf16>, vector<2x128xf32> -> vector<2x128xf32>
    %14 = vector.broadcast %4 : vector<1x128xf32> to vector<2x128xf32>
    %15 = arith.addf %13, %14 : vector<2x128xf32>
    %16 = arith.truncf %15 : vector<2x128xf32> to vector<2x128xbf16>
    %17 = math.tanh %16 : vector<2x128xbf16>
    %cst_14 = arith.constant dense<0.000000e+00> : vector<2x128xf32>
    %18 = tpu.matmul %17, %5, %cst_14 {dimension_numbers = #tpu.dot_dimension_numbers<[1], [0], [0], [1], [0, 0, 1, 1], [], []>} : vector<2x128xbf16>, vector<128x128xbf16>, vector<2x128xf32> -> vector<2x128xf32>
    %19 = vector.broadcast %6 : vector<1x128xf32> to vector<2x128xf32>
    %20 = arith.addf %18, %19 : vector<2x128xf32>
    %c0_15 = arith.constant 0 : index
    %c0_16 = arith.constant 0 : index
    %21 = vector.load %arg8[%c0_15, %c0_16] : memref<2x128xf32, #tpu.memory_space<vmem>>, vector<2x128xf32>
    tpu.vector_store %arg8[%c0_15, %c0_16], %20 {strides = array<i32>} : memref<2x128xf32, #tpu.memory_space<vmem>>, vector<2x128xf32>,
    return
  }
  func.func @transform_0(%arg0: i32) -> (i32, i32) {
    %c0_i32 = arith.constant 0 : i32
    %c0_i32_0 = arith.constant 0 : i32
    return %arg0, %c0_i32 : i32, i32
  }
  func.func @transform_1(%arg0: i32) -> (i32, i32) {
    %c0_i32 = arith.constant 0 : i32
    %c0_i32_0 = arith.constant 0 : i32
    %c0_i32_1 = arith.constant 0 : i32
    return %c0_i32, %c0_i32_0 : i32, i32
  }
  func.func @transform_2(%arg0: i32) -> (i32, i32) {
    %c0_i32 = arith.constant 0 : i32
    %c0_i32_0 = arith.constant 0 : i32
    %c0_i32_1 = arith.constant 0 : i32
    return %c0_i32, %c0_i32_0 : i32, i32
  }
  func.func @transform_3(%arg0: i32) -> (i32, i32) {
    %c0_i32 = arith.constant 0 : i32
    %c0_i32_0 = arith.constant 0 : i32
    %c0_i32_1 = arith.constant 0 : i32
    return %c0_i32, %c0_i32_0 : i32, i32
  }
  func.func @transform_4(%arg0: i32) -> (i32, i32) {
    %c0_i32 = arith.constant 0 : i32
    %c0_i32_0 = arith.constant 0 : i32
    %c0_i32_1 = arith.constant 0 : i32
    return %c0_i32, %c0_i32_0 : i32, i32
  }
  func.func @transform_5(%arg0: i32) -> (i32, i32) {
    %c0_i32 = arith.constant 0 : i32
    %c0_i32_0 = arith.constant 0 : i32
    %c0_i32_1 = arith.constant 0 : i32
    return %c0_i32, %c0_i32_0 : i32, i32
  }
  func.func @transform_6(%arg0: i32) -> (i32, i32) {
    %c0_i32 = arith.constant 0 : i32
    %c0_i32_0 = arith.constant 0 : i32
    %c0_i32_1 = arith.constant 0 : i32
    return %c0_i32, %c0_i32_0 : i32, i32
  }
  func.func @transform_7(%arg0: i32) -> (i32, i32) {
    %c0_i32 = arith.constant 0 : i32
    %c0_i32_0 = arith.constant 0 : i32
    return %arg0, %c0_i32 : i32, i32
  }
}

</mosaic_0001>

<bundles_post_ra>
// kernel: tpu_custom_call.1
= control target key start
LH: loop header
LB: loop body
LE: loop exit
PB: predicated region body
PF: predicated region fallthrough
CT: control target
= control target key end

     0   :  { %12 = vsyncpa [#allocation3], 0  ;;  %s716_s0 = inlined_call_operand.hbm [shape: f32[2,16], index: 0, kind: input, shape index: {}]   ;;  %s717_s1 = inlined_call_operand.hbm [shape: bf16[16,128], index: 1, kind: input, shape index: {}]   ;;  %s718_s2 = inlined_call_operand.vmem [shape: f32[1,128], index: 2, kind: input, shape index: {}]   ;;  %s719_s3 = inlined_call_operand.hbm [shape: bf16[128,128], index: 3, kind: input, shape index: {}]   ;;  %s720_s4 = inlined_call_operand.vmem [shape: f32[1,128], index: 4, kind: input, shape index: {}]   ;;  %s721_s5 = inlined_call_operand.hbm [shape: bf16[128,128], index: 5, kind: input, shape index: {}]   ;;  %s722_s6 = inlined_call_operand.vmem [shape: f32[1,128], index: 6, kind: input, shape index: {}]   ;;  %s723_s7 = inlined_call_operand.hbm [shape: f32[2,128], index: 7, kind: output, shape index: {}]  }
   0x1   :  { %13 = vsyncpa [#allocation6], 0 }
   0x2   :  { %14 = vsyncpa [#allocation9], 0 }
   0x3   :  { %15 = vsyncpa [#allocation4], 0  ;;  %s611_s24 = smov [#allocation5]  }
   0x4   :  { %s31_s25 = sshll.u32 %s611_s24, 4  ;;  %s32_s25 = int_to_ptr.vmem [resolvable:$true] %s31_s25 }
   0x5   :  { %s511_s26 = scalar_lea.vmem %s32_s25, 128  ;;  %p516_p1 = scmp.lt.s32.totalorder %s32_s25, %s32_s25 }
   0x6   :  { %p512_p0 = scmp.ne.s32.totalorder %s32_s25, %s511_s26  ;;  %p517_p2 = scmp.lt.s32.totalorder %s511_s26, %s511_s26 }
   0x8   :  { %p518_p3 = por %p517_p2, %p516_p1 }
   0xa   :  { %p519_p4 = pnand %p518_p3, %p512_p0 }
   0xc   :  { %522 = shalt.err (!%p519_p4)
}
   0xd   :  { %s612_s27 = smov 64   ;;  %s613_s28 = smov 4  }
   0xe   :  { %37 = dma.hbm_to_vmem [thread:$0]  %s717_s1, 128, %s32_s25, [#allocation6], %s612_s27, %s612_s27, %s613_s28  }
   0xf   :  { %s614_s8 = smov [#allocation2]   ;;  %s615_s10 = smov [#allocation7]  }
  0x10   :  { %s22_s9 = sshll.u32 %s614_s8, 4  ;;  %s45_s11 = sshll.u32 %s615_s10, 4  ;;  %s23_s9 = int_to_ptr.vmem [resolvable:$true] %s22_s9  ;;  %s46_s11 = int_to_ptr.vmem [resolvable:$true] %s45_s11 }
  0x11   :  { %s531_s12 = scalar_lea.vmem %s23_s9, 32  ;;  %p536_p6 = scmp.lt.s32.totalorder %s23_s9, %s23_s9 }
  0x12   :  { %p532_p5 = scmp.ne.s32.totalorder %s23_s9, %s531_s12  ;;  %p537_p7 = scmp.lt.s32.totalorder %s531_s12, %s531_s12 }
  0x14   :  { %p538_p8 = por %p537_p7, %p536_p6 }
  0x16   :  { %p539_p9 = pnand %p538_p8, %p532_p5 }
  0x18   :  { %542 = shalt.err (!%p539_p9)
}
  0x19   :  { %25 = dma.hbm_to_vmem [thread:$0]  %s716_s0, 32, %s23_s9, [#allocation3]  }
  0x1a   :  { %s551_s15 = scalar_lea.vmem %s46_s11, 1024  ;;  %p556_p11 = scmp.lt.s32.totalorder %s46_s11, %s46_s11 }
  0x1b   :  { %p552_p10 = scmp.ne.s32.totalorder %s46_s11, %s551_s15  ;;  %p557_p12 = scmp.lt.s32.totalorder %s551_s15, %s551_s15 }
  0x1d   :  { %p558_p13 = por %p557_p12, %p556_p11 }
  0x1f   :  { %p559_p0 = pnand %p558_p13, %p552_p10 }
  0x21   :  { %562 = shalt.err (!%p559_p0)
}
  0x22   :  { %51 = dma.hbm_to_vmem [thread:$0]  %s719_s3, 1024, %s46_s11, [#allocation6], %s612_s27, %s612_s27, %s613_s28  }
  0x23   :  { %s616_s17 = smov [#allocation8]  }
  0x24   :  { %s59_s18 = sshll.u32 %s616_s17, 4  ;;  %s60_s18 = int_to_ptr.vmem [resolvable:$true] %s59_s18 }
  0x25   :  { %s571_s19 = scalar_lea.vmem %s60_s18, 1024  ;;  %p576_p2 = scmp.lt.s32.totalorder %s60_s18, %s60_s18 }
  0x26   :  { %p572_p1 = scmp.ne.s32.totalorder %s60_s18, %s571_s19  ;;  %p577_p3 = scmp.lt.s32.totalorder %s571_s19, %s571_s19 }
  0x28   :  { %p578_p4 = por %p577_p3, %p576_p2 }
  0x2a   :  { %p579_p5 = pnand %p578_p4, %p572_p1 }
  0x2c   :  { %582 = shalt.err (!%p579_p5)
}
  0x2d   :  { %65 = dma.hbm_to_vmem [thread:$0]  %s721_s5, 1024, %s60_s18, [#allocation9], %s612_s27, %s612_s27, %s613_s28  }
  0x2e   :  { %603 = dma.done.wait [#allocation3], 32  }
  0x2f   :  { %604 = vsyncadd [#allocation3], 4294967264 }
  0x30   :  { %605 = dma.done.wait [#allocation6], 1152  }
  0x31   :  { %606 = vsyncadd [#allocation6], 4294966144 }
  0x32   :  { %607 = dma.done.wait [#allocation9], 1024  }
  0x33   :  { %608 = vsyncadd [#allocation9], 4294966272  ;;  %v617_v0 = vmov 0.0   ;;  %vm618_vm0 = vmmov 0   ;;  %v482_v1 = vld [vmem:[#allocation5] sm:$0xff]   ;;  %vm132_vm1 = vcmask 130048  }
  0x34   :  { %427 = vmatprep.subr.bf16.mxu0 %v617_v0  ;;  %429 = vmatprep.mubr.msk.bf16.mxu0 %vm618_vm0, %v617_v0  ;;  %v81_v2 = vld [vmem:[#allocation2] sm:$0x3]  ;;  %v483_v4 = vld [vmem:[#allocation7 + $0x38] sm:$0xff]   ;;  %v485_v6 = vld [vmem:[#allocation7 + $0x28] sm:$0xff]   ;;  %s619_s24 = smov [#allocation10]  }
  0x35   :  { %433 = vmatprep.subr.bf16.mxu1 %v617_v0  ;;  %449 = vmatprep.mubr.msk.bf16.mxu1 %vm618_vm0, %v617_v0  ;;  %v119_v3 = vpack.c.bf16 %v81_v2, %v81_v2  ;;  %v484_v5 = vld [vmem:[#allocation7 + $0x30] sm:$0xff]   ;;  %v486_v7 = vld [vmem:[#allocation7 + $0x20] sm:$0xff]   ;;  %v487_v8 = vld [vmem:[#allocation7 + $0x18] sm:$0xff]   ;;  %s375_s25 = sshll.u32 %s619_s24, 4  ;;  %s376_s25 = int_to_ptr.vmem [resolvable:$true] %s375_s25 }
  0x36   :  { %428 = vmatpush3.bf16.msra.mxu0 %v482_v1  ;;  %434 = vmatpush3.bf16.msra.mxu1 %v483_v4  ;;  %v488_v9 = vld [vmem:[#allocation7 + $0x10] sm:$0xff]   ;;  %v489_v10 = vld [vmem:[#allocation7 + $0x8] sm:$0xff]   ;;  %v490_v11 = vld [vmem:[#allocation7] sm:$0xff]   ;;  %p588_p7 = scmp.lt.s32.totalorder %s376_s25, %s376_s25 }
  0x37   :  { %453 = vmatprep.subr.bf16.mxu0 %v617_v0  ;;  %435 = vmatprep.subr.bf16.mxu1 %v617_v0  ;;  %v491_v12 = vld [vmem:[#allocation8 + $0x38] sm:$0xff]   ;;  %v492_v13 = vld [vmem:[#allocation8 + $0x30] sm:$0xff]   ;;  %v493_v14 = vld [vmem:[#allocation8 + $0x28] sm:$0xff]  }
  0x38   :  { %v386_v15 = vld [vmem:[%s718_s2] ss:$0 sm:$0xff]  ;;  %v494_v23 = vld [vmem:[#allocation8 + $0x20] sm:$0xff]   ;;  %v495_v24 = vld [vmem:[#allocation8 + $0x18] sm:$0xff]  }
  0x39   :  { %430 = vmatmul.mubr.msk.bf16.vlgmr.msra.gmra.mxu0 %vm132_vm1, %v119_v3  ;;  %v496_v25 = vld [vmem:[#allocation8 + $0x10] sm:$0xff]   ;;  %v497_v26 = vld [vmem:[#allocation8 + $0x8] sm:$0xff]   ;;  %v498_v27 = vld [vmem:[#allocation8] sm:$0xff]  }
  0x3a   :  { %469 = vmatprep.mubr.msk.bf16.mxu0 %vm618_vm0, %v617_v0  ;;  %436 = vmatpush3.bf16.msra.mxu1 %v484_v5  ;;  %v389_v28 = vld [vmem:[%s720_s4] ss:$0 sm:$0xff]  ;;  %s583_s4 = scalar_lea.vmem %s376_s25, 32 }
  0x3b   :  { %437 = vmatprep.subr.bf16.mxu1 %v617_v0  ;;  %454 = vmatpush3.bf16.msra.mxu0 %v491_v12  ;;  %v398_v36 = vld [vmem:[%s722_s6] ss:$0 sm:$0xff]  ;;  %p584_p6 = scmp.ne.s32.totalorder %s376_s25, %s583_s4  ;;  %p589_p8 = scmp.lt.s32.totalorder %s583_s4, %s583_s4 }
  0x3c   :  { %455 = vmatprep.subr.bf16.mxu0 %v617_v0 }
  0x3d   :  { %p590_p9 = por %p589_p8, %p588_p7 }
  0x3e   :  { %438 = vmatpush3.bf16.msra.mxu1 %v485_v6 }
  0x3f   :  { %439 = vmatprep.subr.bf16.mxu1 %v617_v0  ;;  %456 = vmatpush3.bf16.msra.mxu0 %v492_v13  ;;  %p591_p10 = pnand %p590_p9, %p584_p6 }
  0x40   :  { %457 = vmatprep.subr.bf16.mxu0 %v617_v0 }
  0x42   :  { %440 = vmatpush3.bf16.msra.mxu1 %v486_v7 }
  0x43   :  { %441 = vmatprep.subr.bf16.mxu1 %v617_v0  ;;  %458 = vmatpush3.bf16.msra.mxu0 %v493_v14 }
  0x44   :  { %459 = vmatprep.subr.bf16.mxu0 %v617_v0 }
  0x46   :  { %442 = vmatpush3.bf16.msra.mxu1 %v487_v8 }
  0x47   :  { %443 = vmatprep.subr.bf16.mxu1 %v617_v0  ;;  %460 = vmatpush3.bf16.msra.mxu0 %v494_v23 }
  0x48   :  { %461 = vmatprep.subr.bf16.mxu0 %v617_v0 }
  0x4a   :  { %444 = vmatpush3.bf16.msra.mxu1 %v488_v9 }
  0x4b   :  { %445 = vmatprep.subr.bf16.mxu1 %v617_v0  ;;  %462 = vmatpush3.bf16.msra.mxu0 %v495_v24 }
  0x4c   :  { %463 = vmatprep.subr.bf16.mxu0 %v617_v0 }
  0x4e   :  { %446 = vmatpush3.bf16.msra.mxu1 %v489_v10 }
  0x4f   :  { %447 = vmatprep.subr.bf16.mxu1 %v617_v0  ;;  %464 = vmatpush3.bf16.msra.mxu0 %v496_v25 }
  0x50   :  { %465 = vmatprep.subr.bf16.mxu0 %v617_v0 }
  0x52   :  { %448 = vmatpush3.bf16.msra.mxu1 %v490_v11 }
  0x53   :  { %466 = vmatpush3.bf16.msra.mxu0 %v497_v26 }
  0x54   :  { %467 = vmatprep.subr.bf16.mxu0 %v617_v0 }
  0x57   :  { %468 = vmatpush3.bf16.msra.mxu0 %v498_v27 }
  0xf9   :  { %v170_v16 = vpop.f32.mrf.mxu0 }
  0xfa   :  { %v171_v17 = vadd.f32 %v386_v15, %v170_v16 }
  0xfb   :  { %v431_v18 = vpop.f32.mrf.mxu0 }
  0xfc   :  { %v176_v19 = vpack.c.bf16 %v171_v17, %v171_v17 }
  0xfd   :  { %v173_v20 = vpop.f32.mrf.mxu0 }
  0xfe   :  { %499 = vtanh.bf16 %v176_v19 }
  0xff   :  { %v432_v21 = vpop.f32.mrf.mxu0 }
 0x10c   :  { %v500_v22 = vpop.eup %499 }
 0x10d   :  { %450 = vmatmul.mubr.bf16.vlgmr.msra.gmra.mxu1 %v500_v22 }
 0x1cd   :  { %v266_v29 = vpop.f32.mrf.mxu1 }
 0x1ce   :  { %v267_v30 = vadd.f32 %v389_v28, %v266_v29 }
 0x1cf   :  { %v451_v31 = vpop.f32.mrf.mxu1 }
 0x1d0   :  { %v272_v32 = vpack.c.bf16 %v267_v30, %v267_v30 }
 0x1d1   :  { %v269_v33 = vpop.f32.mrf.mxu1 }
 0x1d2   :  { %501 = vtanh.bf16 %v272_v32 }
 0x1d3   :  { %v452_v34 = vpop.f32.mrf.mxu1 }
 0x1e0   :  { %v502_v35 = vpop.eup %501 }
 0x1e1   :  { %470 = vmatmul.mubr.bf16.vlgmr.msra.gmra.mxu0 %v502_v35 }
 0x2a1   :  { %v362_v37 = vpop.f32.mrf.mxu0 }
 0x2a2   :  { %v363_v38 = vadd.f32 %v398_v36, %v362_v37 }
 0x2a3   :  { %v471_v39 = vpop.f32.mrf.mxu0 }
 0x2a4   :  { %368 = vst [vmem:[#allocation10] sm:$0x3] %v363_v38 }
 0x2a5   :  { %v365_v40 = vpop.f32.mrf.mxu0 }
 0x2a6   :  { %594 = shalt.err (!%p591_p10)
}
 0x2a7   :  { %378 = dma.vmem_to_hbm [thread:$0]  %s376_s25, 32, %s723_s7, [#allocation4]   ;;  %v472_v41 = vpop.f32.mrf.mxu0 }
 0x2a8   :  { %609 = dma.done.wait [#allocation4], 32  }
 0x2a9   :  { %610 = vsyncadd [#allocation4], 4294967264 }
 0x2aa   :  { %382 = vsyncpa [#allocation3], 1 }
 0x2ab   :  { %383 = vsyncpa [#allocation6], 1 }
 0x2ac   :  { %384 = vsyncpa [#allocation9], 1 }
 0x2ad   :  { %385 = vsyncpa [#allocation4], 1 }

</bundles_post_ra>
